<compile_context>
chip_gen: v6e
topology: v6e:2x2x1
jax: 0.10.0
libtpu: 0.0.40
codegen_flags: <defaults>
</compile_context>

<pallas_src>
import functools
import math

import jax
import jax.numpy as jnp
from jax.experimental import pallas as pl
from jax.experimental.pallas import tpu as pltpu


def _rmsnorm_kernel(x_ref, w_ref, o_ref, *, eps: float, inv_hidden: float,
                    cast_before_scale: bool):
    """One row-tile of RMSNorm.

    x_ref : VMEM (block_rows, hidden)  input tile (any float dtype)
    w_ref : VMEM (1, hidden)           weight (replicated across grid)
    o_ref : VMEM (block_rows, hidden)  output tile (weight dtype / f32)
    """
    x = x_ref[...].astype(jnp.float32)                       # hidden_states.to(float32)
    ss = jnp.sum(x * x, axis=-1, keepdims=True)               # sum of squares (XLU)
    inv_rms = jax.lax.rsqrt(ss * inv_hidden + eps)             # rsqrt(mean + eps) on EUP
    # Re-read the tile so the f32 temp used for the reduction need not stay
    # live across the scale (keeps VMEM/vreg pressure to ~one f32 tile).
    normed = x_ref[...].astype(jnp.float32) * inv_rms
    if cast_before_scale:
        # torch: cast to weight dtype (fp16/bf16) BEFORE multiplying by weight
        normed = normed.astype(o_ref.dtype)
    o_ref[...] = (w_ref[...] * normed).astype(o_ref.dtype)    # weight * hidden_states


def _round_up(x: int, m: int) -> int:
    return ((x + m - 1) // m) * m


# Working-set budget for block sizing.  24 MiB keeps the (double-buffered
# in + double-buffered out + f32 temps) tile under the 32 MiB scoped default
# of v6e/v7x and well inside v7x's 64 MiB physical VMEM; vmem_limit_bytes is
# raised to 32 MiB so v5e (16 MiB default scoped) also accepts it.
_VMEM_TILE_BUDGET = 24 << 20
_VMEM_LIMIT_BYTES = 32 << 20
_MAX_BLOCK_ROWS = 1024


def _pick_block_rows(rows: int, hidden: int, in_bytes: int, out_bytes: int) -> int:
    # Per-row VMEM cost: 2x double-buffered input, 2x double-buffered output,
    # ~8 bytes/elem of f32 intermediates inside the kernel body.
    per_row = hidden * (2 * in_bytes + 2 * out_bytes + 8)
    br = max(8, min(_MAX_BLOCK_ROWS, (_VMEM_TILE_BUDGET // max(per_row, 1)) // 8 * 8))
    # v7x megacore: ensure >=2 grid steps when the row count allows it, so the
    # "parallel" axis can shard across both TensorCores.
    if rows > 8:
        br = min(br, max(8, _round_up(-(-rows // 2), 8)))
    # Never exceed the (sublane-rounded) problem size.
    br = min(br, _round_up(rows, 8))
    return max(8, br)


def rmsnorm(hidden_states: jax.Array, weight: jax.Array, eps: float) -> jax.Array:
    """RMSNorm over the last axis, matching _IPEXRMSNormRef.forward semantics."""
    orig_shape = hidden_states.shape
    hidden = orig_shape[-1]
    rows = math.prod(orig_shape[:-1]) if len(orig_shape) > 1 else 1
    x2 = hidden_states.reshape(rows, hidden)

    half_dtypes = (jnp.dtype(jnp.bfloat16), jnp.dtype(jnp.float16))
    cast_before_scale = jnp.dtype(weight.dtype) in half_dtypes
    out_dtype = weight.dtype if cast_before_scale else jnp.promote_types(
        weight.dtype, jnp.float32)

    in_bytes = jnp.dtype(x2.dtype).itemsize
    out_bytes = jnp.dtype(out_dtype).itemsize
    block_rows = _pick_block_rows(rows, hidden, in_bytes, out_bytes)

    w2 = weight.reshape(1, hidden)
    grid = (pl.cdiv(rows, block_rows),)   # ragged last tile handled by Pallas masking

    kernel = functools.partial(
        _rmsnorm_kernel,
        eps=float(eps),
        inv_hidden=float(1.0 / hidden),
        cast_before_scale=cast_before_scale,
    )

    out = pl.pallas_call(
        kernel,
        out_shape=jax.ShapeDtypeStruct((rows, hidden), out_dtype),
        grid=grid,
        in_specs=[
            pl.BlockSpec((block_rows, hidden), lambda i: (i, 0)),  # x row-tile
            pl.BlockSpec((1, hidden), lambda i: (0, 0)),           # weight (replicated)
        ],
        out_specs=pl.BlockSpec((block_rows, hidden), lambda i: (i, 0)),
        compiler_params=pltpu.CompilerParams(
            dimension_semantics=("parallel",),
            vmem_limit_bytes=_VMEM_LIMIT_BYTES,
        ),
    )(x2, w2)

    return out.reshape(orig_shape[:-1] + (hidden,))


class IPEXRMSNormPallas:
    """JAX/Pallas port of _IPEXRMSNormRef (holds weight + variance_epsilon)."""

    def __init__(self, weight: jax.Array, variance_epsilon: float):
        self.weight = weight
        self.variance_epsilon = float(variance_epsilon)

    def forward(self, hidden_states: jax.Array) -> jax.Array:
        return rmsnorm(hidden_states, self.weight, self.variance_epsilon)

    __call__ = forward


def _reference(hidden_states, weight, eps):
    """Pure-JAX mirror of the PyTorch forward (for verification)."""
    hs = hidden_states.astype(jnp.float32)
    var = jnp.mean(hs * hs, axis=-1, keepdims=True)
    hs = hs * jax.lax.rsqrt(var + eps)
    if jnp.dtype(weight.dtype) in (jnp.dtype(jnp.bfloat16), jnp.dtype(jnp.float16)):
        hs = hs.astype(weight.dtype)
    return weight * hs


if __name__ == "__main__":
    key = jax.random.PRNGKey(0)
    k1, k2, k3, k4 = jax.random.split(key, 4)

    # Case 1: bf16 weight / bf16 activations (the common LLM path), lane-dense,
    # rows=16 -> block_rows=8 -> 2 grid steps (exercises the megacore cap).
    batch, seq, hidden = 2, 8, 128
    eps = 1e-6
    x = jax.random.normal(k1, (batch, seq, hidden), dtype=jnp.float32).astype(jnp.bfloat16)
    w = (1.0 + 0.1 * jax.random.normal(k2, (hidden,), dtype=jnp.float32)).astype(jnp.bfloat16)

    mod = IPEXRMSNormPallas(w, eps)
    out = mod(x)
    jax.block_until_ready(out)

    ref = _reference(x, w, eps)
    assert out.shape == x.shape
    assert out.dtype == w.dtype
    assert jnp.allclose(out.astype(jnp.float32), ref.astype(jnp.float32),
                        atol=2e-2, rtol=2e-2)

    # Case 2: f32 weight, ragged row count (15 rows) + non-128 hidden
    # (exercises the no-pad ragged last tile and the no-cast branch).
    b2, s2, h2 = 3, 5, 96
    x2 = jax.random.normal(k3, (b2, s2, h2), dtype=jnp.float32)
    w2 = 1.0 + 0.05 * jax.random.normal(k4, (h2,), dtype=jnp.float32)
    mod2 = IPEXRMSNormPallas(w2, 1e-5)
    out2 = mod2(x2)
    jax.block_until_ready(out2)
    ref2 = _reference(x2, w2, 1e-5)
    assert out2.shape == x2.shape
    assert out2.dtype == jnp.float32
    assert jnp.allclose(out2, ref2, atol=1e-5, rtol=1e-5)

    print("KERNEL_OK")
</pallas_src>

<mosaic_0001>
module attributes {stable_mosaic.version = 11 : i64} {
  func.func @_rmsnorm_kernel(%arg0: i32, %arg1: memref<8x128xbf16, #tpu.memory_space<vmem>>, %arg2: memref<1x128xbf16, #tpu.memory_space<vmem>>, %arg3: memref<8x128xbf16, #tpu.memory_space<vmem>>) attributes {dimension_semantics = [#tpu.dimension_semantics<parallel>], iteration_bounds = array<i64: 2>, scalar_prefetch = 0 : i64, scratch_operands = 0 : i64, tpu.core_type = #tpu.core_type<tc>, window_params = [{transform_indices = @transform_0, window_bounds = array<i64: 8, 128>}, {pipeline_mode = #tpu.pipeline_mode<synchronous>, transform_indices = @transform_1, window_bounds = array<i64: 1, 128>}, {transform_indices = @transform_2, window_bounds = array<i64: 8, 128>}]} {
    %c0 = arith.constant 0 : index
    %c0_0 = arith.constant 0 : index
    %0 = vector.load %arg1[%c0, %c0_0] : memref<8x128xbf16, #tpu.memory_space<vmem>>, vector<8x128xbf16>
    %1 = arith.extf %0 : vector<8x128xbf16> to vector<8x128xf32>
    %2 = arith.mulf %1, %1 : vector<8x128xf32>
    %cst = arith.constant dense<0.000000e+00> : vector<8xf32>
    %3 = vector.multi_reduction <add>, %2, %cst [1] : vector<8x128xf32> to vector<8xf32>
    %4 = vector.shape_cast %3 : vector<8xf32> to vector<8x1xf32>
    %cst_1 = arith.constant 7.812500e-03 : f32
    %5 = vector.broadcast %cst_1 : f32 to vector<8x1xf32>
    %6 = arith.mulf %4, %5 : vector<8x1xf32>
    %cst_2 = arith.constant 9.99999997E-7 : f32
    %7 = vector.broadcast %cst_2 : f32 to vector<8x1xf32>
    %8 = arith.addf %6, %7 : vector<8x1xf32>
    %9 = math.rsqrt %8 : vector<8x1xf32>
    %c0_3 = arith.constant 0 : index
    %c0_4 = arith.constant 0 : index
    %10 = vector.load %arg1[%c0_3, %c0_4] : memref<8x128xbf16, #tpu.memory_space<vmem>>, vector<8x128xbf16>
    %11 = arith.extf %10 : vector<8x128xbf16> to vector<8x128xf32>
    %12 = vector.broadcast %9 : vector<8x1xf32> to vector<8x128xf32>
    %13 = arith.mulf %11, %12 : vector<8x128xf32>
    %14 = arith.truncf %13 : vector<8x128xf32> to vector<8x128xbf16>
    %c0_5 = arith.constant 0 : index
    %c0_6 = arith.constant 0 : index
    %15 = vector.load %arg2[%c0_5, %c0_6] : memref<1x128xbf16, #tpu.memory_space<vmem>>, vector<1x128xbf16>
    %16 = vector.broadcast %15 : vector<1x128xbf16> to vector<8x128xbf16>
    %17 = arith.mulf %16, %14 : vector<8x128xbf16>
    %c0_7 = arith.constant 0 : index
    %c0_8 = arith.constant 0 : index
    %18 = vector.load %arg3[%c0_7, %c0_8] : memref<8x128xbf16, #tpu.memory_space<vmem>>, vector<8x128xbf16>
    tpu.vector_store %arg3[%c0_7, %c0_8], %17 {strides = array<i32>} : memref<8x128xbf16, #tpu.memory_space<vmem>>, vector<8x128xbf16>,
    return
  }
  func.func @transform_0(%arg0: i32) -> (i32, i32) {
    %c0_i32 = arith.constant 0 : i32
    %c0_i32_0 = arith.constant 0 : i32
    return %arg0, %c0_i32 : i32, i32
  }
  func.func @transform_1(%arg0: i32) -> (i32, i32) {
    %c0_i32 = arith.constant 0 : i32
    %c0_i32_0 = arith.constant 0 : i32
    %c0_i32_1 = arith.constant 0 : i32
    return %c0_i32, %c0_i32_0 : i32, i32
  }
  func.func @transform_2(%arg0: i32) -> (i32, i32) {
    %c0_i32 = arith.constant 0 : i32
    %c0_i32_0 = arith.constant 0 : i32
    return %arg0, %c0_i32 : i32, i32
  }
}

</mosaic_0001>

<bundles_post_ra>
// kernel: tpu_custom_call.1
= control target key start
LH: loop header
LB: loop body
LE: loop exit
PB: predicated region body
PF: predicated region fallthrough
CT: control target
= control target key end

     0   :  { %7 = vsyncpa [#allocation3], 0  ;;  %s578_s0 = inlined_call_operand.hbm [shape: bf16[16,128], index: 0, kind: input, shape index: {}]   ;;  %s579_s1 = inlined_call_operand.vmem [shape: bf16[1,128], index: 1, kind: input, shape index: {}]   ;;  %s580_s2 = inlined_call_operand.hbm [shape: bf16[16,128], index: 2, kind: output, shape index: {}]  }
   0x1   :  { %9 = vsyncpa [#allocation3 + $0x1], 0 }
   0x2   :  { %10 = vsyncpa [#allocation4], 0 }
   0x3   :  { %12 = vsyncpa [#allocation4 + $0x1], 0  ;;  %s434_s9 = smov 0   ;;  %s436_s10 = smov 0  }
   0x4   :  { %s438_s11 = smov 0   ;;  %s440_s12 = smov 0  }
   0x5 LB: > { %s455_s13 = sadd.s32 4294967295, %s415_s12   ;;  %s263_s14 = sadd.s32 4294967294, %s415_s12   ;;  %s415_s12 = sphi %s440_s12, %s597_s12   ;;  %s411_s11 = sphi %s438_s11, %s596_s11   ;;  %s407_s10 = sphi %s436_s10, %s595_s10   ;;  %s403_s9 = sphi %s434_s9, %s594_s9  }
   0x6   : > { %s459_s15 = sadd.s32 1, %s415_s12   ;;  %s25_s16 = sadd.s32 1, %s411_s11 }
   0x7   : > { %s22_s17 = ssub.s32 %s415_s12, %s459_s15  ;;  %p32_p0 = scmp.ne.s32.totalorder %s411_s11, %s407_s10 }
   0x8   : > { %p23_p1 = scmp.eq.s32.totalorder %s22_s17, 0  ;;  %p33_p2 = scmp.eq.s32.totalorder %s415_s12, 0 }
   0x9   : > { %p38_p3 = scmp.ne.s32.totalorder %s407_s10, %s403_s9  ;;  %p39_p4 = scmp.eq.s32.totalorder %s455_s13, 0 }
   0xa   : > { %s471_s18 = scalar_select %p23_p1, %s411_s11, %s25_s16  }
   0xb   : > { %p473_p5 = por %p33_p2, %p32_p0  ;;  %p477_p6 = por %p39_p4, %p38_p3 }
   0xc   : > { %p83_p7 = scmp.eq.s32.totalorder %s455_s13, 1  ;;  %p89_p8 = scmp.eq.s32.totalorder %s263_s14, 1 }
   0xd   : > { %s584_s20 = scalar_select %p477_p6, 1, 0 }
   0xe   : > { %p287_p10 = scmp.lt.s32.totalorder %s415_s12, 2  ;;  %p484_p11 = por %p83_p7, %p32_p0 }
   0xf   : > { %p488_p12 = por %p89_p8, %p38_p3  ;;  %s112_s23 = sand.u32 1, %s411_s11  }
  0x10   : > { %s585_s21 = scalar_select %p484_p11, 1, 0 }
  0x11   : > { %s586_s22 = scalar_select %p488_p12, 1, 0 }
  0x12   : > { %s267_s24 = sshll.u32 %s415_s12, 6  ;;  %s266_s25 = sshll.u32 %s112_s23, 2 }
  0x13   : > { %s497_s28 = scalar_lea.hbm %s578_s0, %s267_s24  ;;  %s116_s29 = scalar_lea.vmem [#allocation2], %s266_s25 }
  0x14   : > { %s123_s30 = sshll.u32 %s116_s29, 4  ;;  %p501_p13 = pnand %p287_p10, %p473_p5  ;;  %s505_s30 = int_to_ptr.vmem [resolvable:$true] %s123_s30 }
  0x15   : > { %s113_s4 = scalar_lea.sflag [#allocation3], %s112_s23  ;;  %s323_s5 = scalar_lea.hbm %s497_s28, 64 }
  0x16   : > { %p324_p2 = scmp.ne.s32.totalorder %s497_s28, %s323_s5  ;;  %p325_p3 = pneg %p501_p13 }
  0x17   : > { %s328_s8 = scalar_lea.hbm %s578_s0, 128  ;;  %p329_p5 = scmp.lt.s32.totalorder %s497_s28, %s578_s0 }
  0x18   : > { %p326_p4 = pnand %p325_p3, %p324_p2  ;;  %p330_p8 = scmp.lt.s32.totalorder %s328_s8, %s323_s5 }
  0x1a   : > { %p327_p7 = pneg %p326_p4  ;;  %p331_p10 = por %p330_p8, %p329_p5 }
  0x1c   : > { %p332_p9 = pnand %p331_p10, %p327_p7 }
  0x1e   : > { %335 = shalt.err (!%p332_p9)
}
  0x1f   : > { %s336_s17 = scalar_lea.vmem %s505_s30, 64  ;;  %s417_s19 = smov [#allocation2]  }
  0x20   : > { %p337_p0 = scmp.ne.s32.totalorder %s505_s30, %s336_s17  ;;  %s341_s23 = sshll.u32 %s417_s19, 4  ;;  %s342_s23 = int_to_ptr.vmem [resolvable:$false] %s341_s23 }
  0x21   : > { %s343_s24 = scalar_lea.vmem %s342_s23, 128  ;;  %p344_p4 = scmp.lt.s32.totalorder %s505_s30, %s342_s23 }
  0x22   : > { %p339_p1 = pnand %p337_p0, %p325_p3  ;;  %p345_p12 = scmp.lt.s32.totalorder %s343_s24, %s336_s17 }
  0x24   : > { %p340_p2 = pneg %p339_p1  ;;  %p346_p11 = por %p345_p12, %p344_p4 }
  0x26   : > { %p347_p6 = pnand %p346_p11, %p340_p2 }
  0x28   : > { %350 = shalt.err (!%p347_p6)
}
  0x29   : > { %282 = dma.hbm_to_vmem [thread:$0]  (!%p501_p13), %s497_s28, 64, %s505_s30, %s113_s4  }
  0x2a   : > { %p588_p9 = scmp.lt.s32.totalorder %s415_s12, 3  ;;  %p589_p7 = scmp.ge.s32.totalorder %s415_s12, 1 }
  0x2c   : > { %p129_p0 = pnand %p589_p7, %p588_p9 }
  0x2d   : > { %s532_s25 = sand.u32 (!%p129_p0), 1, %s407_s10   ;;  %p590_p6 = scmp.ne.s32.totalorder (!%p129_p0), %s584_s20, 0 }
  0x2e   : > { %132 = sbr.rel (%p129_p0) target bundleno = 232 (0xe8), region = 28  ;;  %s269_s26 = sshll.u32 (!%p129_p0), %s532_s25, 2 }
  0x2f   : > { %s135_s27 = scalar_lea.sflag (!%p129_p0), [#allocation3], %s532_s25  ;;  %s138_s29 = scalar_lea.vmem (!%p129_p0), [#allocation2], %s269_s26 }
  0x33   : > { %394 = dma.done.wait (%p590_p6), %s135_s27, 64  }
  0x34   : > { %396 = vsyncadd (%p590_p6), %s135_s27, 4294967232  ;;  %v159_v0 = vld [vmem:[%s138_s29] sm:$0xf]  ;;  %v173_v6 = vlaneseq  ;;  %s272_s20 = sshll.u32 %s455_s13, 6  ;;  %s158_s3 = scalar_lea.vmem [#allocation5], %s269_s26 }
  0x35   : > { %v160_v1 = vunpack.c.l.bf16 %v159_v0  ;;  %v169_v8 = vld [vmem:[%s579_s1] sm:$0x1]  ;;  %s193_s4 = sshll.u32 %s158_s3, 4  ;;  %s191_s7 = scalar_lea.hbm %s580_s2, %s272_s20  ;;  %s194_s4 = int_to_ptr.vmem [resolvable:$true] %s193_s4 }
  0x36   : > { %v174_v7 = vshrl.u32 %v173_v6, 7  ;;  %v171_v9 = vpack.i.b16 %v169_v8, %v169_v8  ;;  %s180_s8 = scalar_lea.sflag [#allocation4], %s532_s25  ;;  %s351_s14 = scalar_lea.vmem %s194_s4, 64 }
  0x37   : > { %v161_v2 = vmul.f32 %v160_v1, %v160_v1  ;;  %p352_p11 = scmp.ne.s32.totalorder %s194_s4, %s351_s14  ;;  %p591_p12 = scmp.ne.s32.totalorder %s585_s21, 0 }
  0x38   : > { %v175_v10 = vsub.s32 0, %v174_v7  ;;  %s418_s16 = smov [#allocation5]  }
  0x39   : > { %162 = vadd.xlane.f32.xlu0 %v161_v2  ;;  %p353_p13 = pnand %p352_p11, %p591_p12  ;;  %s355_s17 = sshll.u32 %s418_s16, 4  ;;  %s356_s17 = int_to_ptr.vmem [resolvable:$false] %s355_s17 }
  0x3a   : > { %v176_v13 = vrot.slane %v171_v9, %v175_v10  ;;  %s357_s13 = scalar_lea.vmem %s356_s17, 128  ;;  %p358_p3 = scmp.lt.s32.totalorder %s194_s4, %s356_s17 }
  0x3b   : > { %p354_p1 = pneg %p353_p13  ;;  %p359_p5 = scmp.lt.s32.totalorder %s357_s13, %s351_s14 }
  0x3d   : > { %p360_p8 = por %p359_p5, %p358_p3 }
  0x3f   : > { %p361_p10 = pnand %p360_p8, %p354_p1 }
  0xc2   : > { %v163_v3 = vpop.xlane.xlu0 %162 }
  0xc3   : > { %v164_v4 = vmul.f32 0.0078125, %v163_v3 }
  0xc5   : > { %v165_v5 = vadd.f32 1e-06, %v164_v4 }
  0xc7   : > { %321 = vrsqrt.f32 %v165_v5 }
  0xd4   : > { %v322_v11 = vpop.eup %321 }
  0xd5   : > { %v167_v12 = vmul.f32 %v322_v11, %v160_v1 }
  0xd7   : > { %v168_v14 = vpack.c.bf16 %v167_v12, %v167_v12 }
  0xd9   : > { %v177_v15 = vmul.bf16 %v176_v13, %v168_v14 }
  0xdb   : > { %178 = vst [vmem:[%s158_s3] sm:$0xf] %v177_v15 }
  0xdc   : > { %364 = shalt.err (!%p361_p10)
}
  0xdd   : > { %s365_s19 = scalar_lea.hbm %s191_s7, 64  ;;  %s369_s25 = scalar_lea.hbm %s580_s2, 128 }
  0xde   : > { %p366_p2 = scmp.ne.s32.totalorder %s191_s7, %s365_s19  ;;  %p370_p7 = scmp.lt.s32.totalorder %s191_s7, %s580_s2 }
  0xdf   : > { %p371_p0 = scmp.lt.s32.totalorder %s369_s25, %s365_s19 }
  0xe0   : > { %p367_p4 = pnand %p366_p2, %p591_p12 }
  0xe1   : > { %p372_p6 = por %p371_p0, %p370_p7 }
  0xe2   : > { %p368_p9 = pneg %p367_p4 }
  0xe4   : > { %p373_p11 = pnand %p372_p6, %p368_p9 }
  0xe6   : > { %376 = shalt.err (!%p373_p11)
}
  0xe7   : > { %277 = dma.vmem_to_hbm [thread:$0]  (%p591_p12), %s194_s4, 64, %s191_s7, %s180_s8  }
  0xe8 PF: > { %s205_s29 = sand.u32 1, %s403_s9   ;;  %p592_p13 = scmp.ne.s32.totalorder %s586_s22, 0 }
  0xe9   : > { %p593_p1 = scmp.ge.s32.totalorder %s415_s12, 2  ;;  %s206_s28 = scalar_lea.sflag [#allocation4], %s205_s29 }
  0xeb   : > { %p284_p3 = pnand %p593_p1, %p592_p13 }
  0xed   : > { %p285_p5 = pneg %p284_p3 }
  0xef   : > { %398 = dma.done.wait (%p285_p5), %s206_s28, 64  }
  0xf0   : > { %400 = vsyncadd (%p285_p5), %s206_s28, 4294967232  ;;  %p15_p8 = scmp.ge.s32.totalorder %s459_s15, 4   ;;  %s594_s9 = smov %s407_s10 }
  0xf1   : > { %s595_s10 = smov %s411_s11  ;;  %s596_s11 = smov %s471_s18 }
  0xf2   : > { %s597_s12 = smov %s459_s15  ;;  %17 = sbr.rel (!%p15_p8) target bundleno = 5 (0x5), region = 73 }
  0xf7   :  { %211 = vsyncpa [#allocation3], 1 }
  0xf8   :  { %213 = vsyncpa [#allocation3 + $0x1], 1 }
  0xf9   :  { %214 = vsyncpa [#allocation4], 1 }
  0xfa   :  { %216 = vsyncpa [#allocation4 + $0x1], 1 }

</bundles_post_ra>
